<compile_context>
chip_gen: v5e
topology: v5e:2x2
jax: 0.10.0
libtpu: 0.0.40
codegen_flags: <defaults>
</compile_context>

<pallas_src>
import functools

import jax
import jax.numpy as jnp
from jax.experimental import pallas as pl
from jax.experimental.pallas import tpu as pltpu

BN_EPS = 1e-5
LANE = 128

# Conservative VMEM budget used to (a) gate the fully-fused per-image path and
# (b) cap the lane tile of the tiled fallback.  Chosen against v7x's 32 MiB
# scoped default (64 MiB physical); v5e/v6e have 128 MiB so never the limit.
_VMEM_BUDGET_BYTES = 24 * 1024 * 1024


# ----------------------------------------------------------------------------
# Kernels
# ----------------------------------------------------------------------------
def _ms_cam_fused_kernel(x_ref, w1_ref, b1_ref, w2_ref, b2_ref,
                         g1_ref, gb1_ref, g2_ref, gb2_ref, o_ref, *, inv_hw):
    """One whole image per grid step: mean + global path + local path + sigmoid."""
    x = x_ref[0]                                                   # (C_in, HW)

    # Global attention: exact spatial mean (lane-axis sum -> XLU, hidden under DMA)
    m = jnp.sum(x.astype(jnp.float32), axis=-1, keepdims=True) * inv_hw   # (C_in, 1)
    hg = jnp.maximum(
        jnp.dot(g1_ref[...], m, preferred_element_type=jnp.float32) + gb1_ref[...],
        0.0)
    # Fold the local-path output bias b2 into the single broadcast add.
    xg = (jnp.dot(g2_ref[...], hg, preferred_element_type=jnp.float32)
          + gb2_ref[...] + b2_ref[...])                            # (C_out, 1)

    # Local attention: two channel matmuls (1x1 convs) + ReLU over the full slab.
    h = jnp.maximum(
        jnp.dot(w1_ref[...], x, preferred_element_type=jnp.float32) + b1_ref[...],
        0.0)
    xl = jnp.dot(w2_ref[...], h, preferred_element_type=jnp.float32)

    o_ref[0] = jax.nn.sigmoid(xl + xg).astype(o_ref.dtype)


def _ms_cam_tiled_kernel(x_ref, xg_ref, w1_ref, b1_ref, w2_ref, o_ref):
    """Lane-tiled local path; xg (global attention + b2) precomputed per image."""
    x = x_ref[0]                                                   # (C_in, T)
    h = jnp.maximum(
        jnp.dot(w1_ref[...], x, preferred_element_type=jnp.float32) + b1_ref[...],
        0.0)
    xl = jnp.dot(w2_ref[...], h, preferred_element_type=jnp.float32)
    o_ref[0] = jax.nn.sigmoid(xl + xg_ref[0]).astype(o_ref.dtype)


# ----------------------------------------------------------------------------
# Wrapper
# ----------------------------------------------------------------------------
def _const_spec(arr):
    # Full-extent block (last two dims equal the full array dims -> always legal),
    # constant index_map so Pallas never re-DMAs it across grid steps.
    return pl.BlockSpec(arr.shape, lambda *_: (0,) * arr.ndim)


def ms_cam_pallas(x_nchw, params, *, lane_tile=4096, force_tiled=False):
    """x_nchw: (N, C_in, H, W) -> (N, C_out, H, W), dtype preserved."""
    N, C_in, H, W = x_nchw.shape
    HW = H * W
    (w1, b1, w2, b2, g1, gb1, g2, gb2) = params
    C_int, C_out = w1.shape[0], w2.shape[0]
    out_dtype = x_nchw.dtype
    itemsize = jnp.dtype(out_dtype).itemsize

    x = x_nchw.reshape(N, C_in, HW)                 # free reshape (contiguous)

    # ------------------------------------------------------------------
    # Preferred path: fully fused, one (C_in, HW) slab per image.
    # HBM traffic ~= 1 read of x + 1 write of out.
    # ------------------------------------------------------------------
    fused_bytes = (2 * (C_in + C_out) * HW * itemsize        # double-buffered x/out
                   + (C_in + C_int + 2 * C_out) * HW * 4)    # in-kernel f32 temps
    if not force_tiled and fused_bytes <= _VMEM_BUDGET_BYTES:
        kernel = functools.partial(_ms_cam_fused_kernel, inv_hw=1.0 / HW)
        out = pl.pallas_call(
            kernel,
            out_shape=jax.ShapeDtypeStruct((N, C_out, HW), out_dtype),
            grid_spec=pl.GridSpec(
                grid=(N,),
                in_specs=[
                    pl.BlockSpec((1, C_in, HW), lambda n: (n, 0, 0)),
                    _const_spec(w1), _const_spec(b1),
                    _const_spec(w2), _const_spec(b2),
                    _const_spec(g1), _const_spec(gb1),
                    _const_spec(g2), _const_spec(gb2),
                ],
                out_specs=pl.BlockSpec((1, C_out, HW), lambda n: (n, 0, 0)),
            ),
            compiler_params=pltpu.CompilerParams(
                dimension_semantics=("parallel",)),
        )(x, w1, b1, w2, b2, g1, gb1, g2, gb2)
        return out.reshape(N, C_out, H, W)

    # ------------------------------------------------------------------
    # Fallback path (large HW): global path hoisted (tiny (N,C) work), local
    # path lane-tiled.  b2 folded into the precomputed broadcast vector xg2.
    # ------------------------------------------------------------------
    m = jnp.mean(x, axis=-1).astype(jnp.float32)                    # (N, C_in)
    hg = jnp.maximum(m @ g1.T + gb1[:, 0][None, :], 0.0)            # (N, C_int)
    xg2 = (hg @ g2.T + (gb2 + b2)[:, 0][None, :])[:, :, None]       # (N, C_out, 1)
    xg2 = xg2.astype(jnp.float32)

    if HW <= lane_tile:
        T, n_tiles = HW, 1          # single full-extent lane block, no raggedness
    else:
        # Largest multiple-of-128 tile that keeps double-buffered x+out (+temps)
        # within the VMEM budget (matters on v7x; trivially satisfied on v5e/v6e).
        per_lane = 2 * (C_in + C_out) * itemsize + (C_int + C_out) * 4
        t_cap = max(LANE, (_VMEM_BUDGET_BYTES // per_lane) // LANE * LANE)
        T = max(LANE, min((lane_tile // LANE) * LANE, t_cap))
        n_tiles = pl.cdiv(HW, T)    # ragged tail: Pallas masks the tail store;
                                    # math is per-lane so tail garbage is harmless.

    out = pl.pallas_call(
        _ms_cam_tiled_kernel,
        out_shape=jax.ShapeDtypeStruct((N, C_out, HW), out_dtype),
        grid_spec=pl.GridSpec(
            grid=(N, n_tiles),                      # N outer, spatial tiles inner
            in_specs=[
                pl.BlockSpec((1, C_in, T), lambda n, t: (n, 0, t)),   # x tile
                pl.BlockSpec((1, C_out, 1), lambda n, t: (n, 0, 0)),  # xg per image
                _const_spec(w1), _const_spec(b1), _const_spec(w2),
            ],
            out_specs=pl.BlockSpec((1, C_out, T), lambda n, t: (n, 0, t)),
        ),
        compiler_params=pltpu.CompilerParams(
            dimension_semantics=("parallel", "parallel")),
    )(x, xg2, w1, b1, w2)
    return out.reshape(N, C_out, H, W)


# ----------------------------------------------------------------------------
# Parameter construction (folded inference-mode BatchNorm) and reference.
# ----------------------------------------------------------------------------
def fold_conv_bn(w, b, gamma, beta, mean, var):
    """Fold inference-mode BN into a preceding 1x1 conv. Returns (Cout,Cin), (Cout,1)."""
    scale = gamma / jnp.sqrt(var + BN_EPS)
    w_eff = w * scale[:, None]
    b_eff = scale * (b - mean) + beta
    return w_eff, b_eff[:, None]


def make_params(key, c_in, c_out, r):
    c_int = c_in // r
    ks = jax.random.split(key, 8)

    def conv(k, co, ci):
        kw, kb = jax.random.split(k)
        return (jax.random.normal(kw, (co, ci), jnp.float32) * 0.2,
                jax.random.normal(kb, (co,), jnp.float32) * 0.1)

    def bn(k, c):
        k1, k2, k3, k4 = jax.random.split(k, 4)
        gamma = 1.0 + 0.1 * jax.random.normal(k1, (c,), jnp.float32)
        beta = 0.1 * jax.random.normal(k2, (c,), jnp.float32)
        mean = 0.1 * jax.random.normal(k3, (c,), jnp.float32)
        var = 1.0 + 0.1 * jnp.abs(jax.random.normal(k4, (c,), jnp.float32))
        return gamma, beta, mean, var

    lw1, lb1 = conv(ks[0], c_int, c_in)
    lw2, lb2 = conv(ks[1], c_out, c_int)
    lbn1, lbn2 = bn(ks[2], c_int), bn(ks[3], c_out)
    gw1, gbi1 = conv(ks[4], c_int, c_in)
    gw2, gbi2 = conv(ks[5], c_out, c_int)
    gbn1, gbn2 = bn(ks[6], c_int), bn(ks[7], c_out)

    w1, b1 = fold_conv_bn(lw1, lb1, *lbn1)
    w2, b2 = fold_conv_bn(lw2, lb2, *lbn2)
    g1, gb1 = fold_conv_bn(gw1, gbi1, *gbn1)
    g2, gb2 = fold_conv_bn(gw2, gbi2, *gbn2)
    return (w1, b1, w2, b2, g1, gb1, g2, gb2)


def ms_cam_reference(x_nchw, params):
    """Pure-JAX reference (same folded-BN math) for verification."""
    (w1, b1, w2, b2, g1, gb1, g2, gb2) = params
    N, C, H, W = x_nchw.shape
    x = x_nchw.reshape(N, C, H * W)
    h = jnp.maximum(jnp.einsum('ic,ncp->nip', w1, x) + b1[None], 0.0)
    xl = jnp.einsum('oi,nip->nop', w2, h) + b2[None]
    m = jnp.mean(x, axis=2, keepdims=True)
    hg = jnp.maximum(jnp.einsum('ic,ncp->nip', g1, m) + gb1[None], 0.0)
    xg = jnp.einsum('oi,nip->nop', g2, hg) + gb2[None]
    return jax.nn.sigmoid(xl + xg).reshape(N, -1, H, W)


if __name__ == "__main__":
    key = jax.random.PRNGKey(0)
    k_x, k_p = jax.random.split(key)

    # Small shapes consistent with MS_CAM(input_channel=16, output_channel=16, r=4)
    N, C_in, H, W = 2, 16, 16, 16
    C_out, r = 16, 4

    x = jax.random.normal(k_x, (N, C_in, H, W), jnp.float32)
    params = make_params(k_p, C_in, C_out, r)
    ref = ms_cam_reference(x, params)

    # Preferred fully-fused path.
    out = jax.block_until_ready(ms_cam_pallas(x, params))
    assert out.shape == (N, C_out, H, W)
    assert jnp.allclose(out, ref, atol=1e-5, rtol=1e-5), "fused path mismatch"

    # Fused path with HW not a multiple of 128 (full-extent lane block).
    x2 = jax.random.normal(k_x, (N, C_in, 10, 10), jnp.float32)
    out2 = jax.block_until_ready(ms_cam_pallas(x2, params))
    assert jnp.allclose(out2, ms_cam_reference(x2, params), atol=1e-5, rtol=1e-5), \
        "fused path (ragged HW) mismatch"

    # Tiled fallback with a ragged last lane tile (HW=300, T=128 -> 3 tiles).
    x3 = jax.random.normal(k_x, (N, C_in, 20, 15), jnp.float32)
    out3 = jax.block_until_ready(
        ms_cam_pallas(x3, params, lane_tile=128, force_tiled=True))
    assert jnp.allclose(out3, ms_cam_reference(x3, params), atol=1e-5, rtol=1e-5), \
        "tiled path mismatch"

    print("KERNEL_OK")
</pallas_src>

<mosaic_0001>
module attributes {stable_mosaic.version = 11 : i64} {
  func.func @_ms_cam_fused_kernel(%arg0: i32, %arg1: memref<1x16x256xf32, #tpu.memory_space<vmem>>, %arg2: memref<4x16xf32, #tpu.memory_space<vmem>>, %arg3: memref<4x1xf32, #tpu.memory_space<vmem>>, %arg4: memref<16x4xf32, #tpu.memory_space<vmem>>, %arg5: memref<16x1xf32, #tpu.memory_space<vmem>>, %arg6: memref<4x16xf32, #tpu.memory_space<vmem>>, %arg7: memref<4x1xf32, #tpu.memory_space<vmem>>, %arg8: memref<16x4xf32, #tpu.memory_space<vmem>>, %arg9: memref<16x1xf32, #tpu.memory_space<vmem>>, %arg10: memref<1x16x256xf32, #tpu.memory_space<vmem>>) attributes {dimension_semantics = [#tpu.dimension_semantics<parallel>], iteration_bounds = array<i64: 2>, scalar_prefetch = 0 : i64, scratch_operands = 0 : i64, tpu.core_type = #tpu.core_type<tc>, window_params = [{transform_indices = @transform_0, window_bounds = array<i64: 1, 16, 256>}, {pipeline_mode = #tpu.pipeline_mode<synchronous>, transform_indices = @transform_1, window_bounds = array<i64: 4, 16>}, {pipeline_mode = #tpu.pipeline_mode<synchronous>, transform_indices = @transform_2, window_bounds = array<i64: 4, 1>}, {pipeline_mode = #tpu.pipeline_mode<synchronous>, transform_indices = @transform_3, window_bounds = array<i64: 16, 4>}, {pipeline_mode = #tpu.pipeline_mode<synchronous>, transform_indices = @transform_4, window_bounds = array<i64: 16, 1>}, {pipeline_mode = #tpu.pipeline_mode<synchronous>, transform_indices = @transform_5, window_bounds = array<i64: 4, 16>}, {pipeline_mode = #tpu.pipeline_mode<synchronous>, transform_indices = @transform_6, window_bounds = array<i64: 4, 1>}, {pipeline_mode = #tpu.pipeline_mode<synchronous>, transform_indices = @transform_7, window_bounds = array<i64: 16, 4>}, {pipeline_mode = #tpu.pipeline_mode<synchronous>, transform_indices = @transform_8, window_bounds = array<i64: 16, 1>}, {transform_indices = @transform_9, window_bounds = array<i64: 1, 16, 256>}]} {
    %c0 = arith.constant 0 : index
    %c0_0 = arith.constant 0 : index
    %c0_1 = arith.constant 0 : index
    %0 = vector.load %arg1[%c0, %c0_0, %c0_1] : memref<1x16x256xf32, #tpu.memory_space<vmem>>, vector<1x16x256xf32>
    %1 = vector.shape_cast %0 : vector<1x16x256xf32> to vector<16x256xf32>
    %cst = arith.constant dense<0.000000e+00> : vector<16xf32>
    %2 = vector.multi_reduction <add>, %1, %cst [1] : vector<16x256xf32> to vector<16xf32>
    %3 = vector.shape_cast %2 : vector<16xf32> to vector<16x1xf32>
    %cst_2 = arith.constant 3.906250e-03 : f32
    %4 = vector.broadcast %cst_2 : f32 to vector<16x1xf32>
    %5 = arith.mulf %3, %4 : vector<16x1xf32>
    %c0_3 = arith.constant 0 : index
    %c0_4 = arith.constant 0 : index
    %6 = vector.load %arg6[%c0_3, %c0_4] : memref<4x16xf32, #tpu.memory_space<vmem>>, vector<4x16xf32>
    %cst_5 = arith.constant dense<0.000000e+00> : vector<4x1xf32>
    %7 = tpu.matmul %6, %5, %cst_5 {dimension_numbers = #tpu.dot_dimension_numbers<[1], [0], [0], [1], [0, 0, 1, 1], [], []>} : vector<4x16xf32>, vector<16x1xf32>, vector<4x1xf32> -> vector<4x1xf32>
    %c0_6 = arith.constant 0 : index
    %c0_7 = arith.constant 0 : index
    %8 = vector.load %arg7[%c0_6, %c0_7] : memref<4x1xf32, #tpu.memory_space<vmem>>, vector<4x1xf32>
    %9 = arith.addf %7, %8 : vector<4x1xf32>
    %cst_8 = arith.constant 0.000000e+00 : f32
    %10 = vector.broadcast %cst_8 : f32 to vector<4x1xf32>
    %11 = arith.maximumf %9, %10 : vector<4x1xf32>
    %c0_9 = arith.constant 0 : index
    %c0_10 = arith.constant 0 : index
    %12 = vector.load %arg8[%c0_9, %c0_10] : memref<16x4xf32, #tpu.memory_space<vmem>>, vector<16x4xf32>
    %cst_11 = arith.constant dense<0.000000e+00> : vector<16x1xf32>
    %13 = tpu.matmul %12, %11, %cst_11 {dimension_numbers = #tpu.dot_dimension_numbers<[1], [0], [0], [1], [0, 0, 1, 1], [], []>} : vector<16x4xf32>, vector<4x1xf32>, vector<16x1xf32> -> vector<16x1xf32>
    %c0_12 = arith.constant 0 : index
    %c0_13 = arith.constant 0 : index
    %14 = vector.load %arg9[%c0_12, %c0_13] : memref<16x1xf32, #tpu.memory_space<vmem>>, vector<16x1xf32>
    %15 = arith.addf %13, %14 : vector<16x1xf32>
    %c0_14 = arith.constant 0 : index
    %c0_15 = arith.constant 0 : index
    %16 = vector.load %arg5[%c0_14, %c0_15] : memref<16x1xf32, #tpu.memory_space<vmem>>, vector<16x1xf32>
    %17 = arith.addf %15, %16 : vector<16x1xf32>
    %c0_16 = arith.constant 0 : index
    %c0_17 = arith.constant 0 : index
    %18 = vector.load %arg2[%c0_16, %c0_17] : memref<4x16xf32, #tpu.memory_space<vmem>>, vector<4x16xf32>
    %cst_18 = arith.constant dense<0.000000e+00> : vector<4x256xf32>
    %19 = tpu.matmul %18, %1, %cst_18 {dimension_numbers = #tpu.dot_dimension_numbers<[1], [0], [0], [1], [0, 0, 1, 1], [], []>} : vector<4x16xf32>, vector<16x256xf32>, vector<4x256xf32> -> vector<4x256xf32>
    %c0_19 = arith.constant 0 : index
    %c0_20 = arith.constant 0 : index
    %20 = vector.load %arg3[%c0_19, %c0_20] : memref<4x1xf32, #tpu.memory_space<vmem>>, vector<4x1xf32>
    %21 = vector.broadcast %20 : vector<4x1xf32> to vector<4x256xf32>
    %22 = arith.addf %19, %21 : vector<4x256xf32>
    %cst_21 = arith.constant 0.000000e+00 : f32
    %23 = vector.broadcast %cst_21 : f32 to vector<4x256xf32>
    %24 = arith.maximumf %22, %23 : vector<4x256xf32>
    %c0_22 = arith.constant 0 : index
    %c0_23 = arith.constant 0 : index
    %25 = vector.load %arg4[%c0_22, %c0_23] : memref<16x4xf32, #tpu.memory_space<vmem>>, vector<16x4xf32>
    %cst_24 = arith.constant dense<0.000000e+00> : vector<16x256xf32>
    %26 = tpu.matmul %25, %24, %cst_24 {dimension_numbers = #tpu.dot_dimension_numbers<[1], [0], [0], [1], [0, 0, 1, 1], [], []>} : vector<16x4xf32>, vector<4x256xf32>, vector<16x256xf32> -> vector<16x256xf32>
    %27 = vector.broadcast %17 : vector<16x1xf32> to vector<16x256xf32>
    %28 = arith.addf %26, %27 : vector<16x256xf32>
    %29 = arith.negf %28 : vector<16x256xf32>
    %30 = math.exp %29 : vector<16x256xf32>
    %cst_25 = arith.constant 1.000000e+00 : f32
    %31 = vector.broadcast %cst_25 : f32 to vector<16x256xf32>
    %32 = arith.addf %31, %30 : vector<16x256xf32>
    %33 = arith.divf %31, %32 : vector<16x256xf32>
    %c0_26 = arith.constant 0 : index
    %c0_27 = arith.constant 0 : index
    %c0_28 = arith.constant 0 : index
    %34 = vector.load %arg10[%c0_26, %c0_27, %c0_28] : memref<1x16x256xf32, #tpu.memory_space<vmem>>, vector<1x16x256xf32>
    %35 = vector.shape_cast %34 : vector<1x16x256xf32> to vector<16x256xf32>
    %36 = vector.shape_cast %33 : vector<16x256xf32> to vector<1x16x256xf32>
    tpu.vector_store %arg10[%c0_26, %c0_27, %c0_28], %36 {strides = array<i32>} : memref<1x16x256xf32, #tpu.memory_space<vmem>>, vector<1x16x256xf32>,
    return
  }
  func.func @transform_0(%arg0: i32) -> (i32, i32, i32) {
    %c0_i32 = arith.constant 0 : i32
    %c0_i32_0 = arith.constant 0 : i32
    %c0_i32_1 = arith.constant 0 : i32
    return %arg0, %c0_i32, %c0_i32_0 : i32, i32, i32
  }
  func.func @transform_1(%arg0: i32) -> (i32, i32) {
    %c0_i32 = arith.constant 0 : i32
    %c0_i32_0 = arith.constant 0 : i32
    %c0_i32_1 = arith.constant 0 : i32
    return %c0_i32, %c0_i32_0 : i32, i32
  }
  func.func @transform_2(%arg0: i32) -> (i32, i32) {
    %c0_i32 = arith.constant 0 : i32
    %c0_i32_0 = arith.constant 0 : i32
    %c0_i32_1 = arith.constant 0 : i32
    return %c0_i32, %c0_i32_0 : i32, i32
  }
  func.func @transform_3(%arg0: i32) -> (i32, i32) {
    %c0_i32 = arith.constant 0 : i32
    %c0_i32_0 = arith.constant 0 : i32
    %c0_i32_1 = arith.constant 0 : i32
    return %c0_i32, %c0_i32_0 : i32, i32
  }
  func.func @transform_4(%arg0: i32) -> (i32, i32) {
    %c0_i32 = arith.constant 0 : i32
    %c0_i32_0 = arith.constant 0 : i32
    %c0_i32_1 = arith.constant 0 : i32
    return %c0_i32, %c0_i32_0 : i32, i32
  }
  func.func @transform_5(%arg0: i32) -> (i32, i32) {
    %c0_i32 = arith.constant 0 : i32
    %c0_i32_0 = arith.constant 0 : i32
    %c0_i32_1 = arith.constant 0 : i32
    return %c0_i32, %c0_i32_0 : i32, i32
  }
  func.func @transform_6(%arg0: i32) -> (i32, i32) {
    %c0_i32 = arith.constant 0 : i32
    %c0_i32_0 = arith.constant 0 : i32
    %c0_i32_1 = arith.constant 0 : i32
    return %c0_i32, %c0_i32_0 : i32, i32
  }
  func.func @transform_7(%arg0: i32) -> (i32, i32) {
    %c0_i32 = arith.constant 0 : i32
    %c0_i32_0 = arith.constant 0 : i32
    %c0_i32_1 = arith.constant 0 : i32
    return %c0_i32, %c0_i32_0 : i32, i32
  }
  func.func @transform_8(%arg0: i32) -> (i32, i32) {
    %c0_i32 = arith.constant 0 : i32
    %c0_i32_0 = arith.constant 0 : i32
    %c0_i32_1 = arith.constant 0 : i32
    return %c0_i32, %c0_i32_0 : i32, i32
  }
  func.func @transform_9(%arg0: i32) -> (i32, i32, i32) {
    %c0_i32 = arith.constant 0 : i32
    %c0_i32_0 = arith.constant 0 : i32
    %c0_i32_1 = arith.constant 0 : i32
    return %arg0, %c0_i32, %c0_i32_0 : i32, i32, i32
  }
}

</mosaic_0001>

<bundles_post_ra>
// kernel: tpu_custom_call.1
= control target key start
LH: loop header
LB: loop body
LE: loop exit
PB: predicated region body
PF: predicated region fallthrough
CT: control target
= control target key end

     0   :  { %14 = vsyncpa [#allocation3], 0  ;;  %s1174_s0 = inlined_call_operand.hbm [shape: f32[2,16,256], index: 0, kind: input, shape index: {}]   ;;  %s1175_s1 = inlined_call_operand.vmem [shape: f32[4,16], index: 1, kind: input, shape index: {}]   ;;  %s1176_s2 = inlined_call_operand.vmem [shape: f32[4,1], index: 2, kind: input, shape index: {}]   ;;  %s1177_s3 = inlined_call_operand.vmem [shape: f32[16,4], index: 3, kind: input, shape index: {}]   ;;  %s1178_s4 = inlined_call_operand.vmem [shape: f32[16,1], index: 4, kind: input, shape index: {}]   ;;  %s1179_s5 = inlined_call_operand.vmem [shape: f32[4,16], index: 5, kind: input, shape index: {}]   ;;  %s1180_s6 = inlined_call_operand.vmem [shape: f32[4,1], index: 6, kind: input, shape index: {}]   ;;  %s1181_s7 = inlined_call_operand.vmem [shape: f32[16,4], index: 7, kind: input, shape index: {}]   ;;  %s1182_s8 = inlined_call_operand.vmem [shape: f32[16,1], index: 8, kind: input, shape index: {}]   ;;  %s1183_s9 = inlined_call_operand.hbm [shape: f32[2,16,256], index: 9, kind: output, shape index: {}]  }
   0x1   :  { %16 = vsyncpa [#allocation3 + $0x1], 0 }
   0x2   :  { %17 = vsyncpa [#allocation4], 0 }
   0x3   :  { %19 = vsyncpa [#allocation4 + $0x1], 0  ;;  %s981_s30 = smov 0   ;;  %s983_s10 = smov 0  }
   0x4   :  { %s985_s11 = smov 0   ;;  %s987_s12 = smov 0  }
   0x5 LB: > { %1187 = sst [smem:[#allocation8_spill]] %s920_s11  ;;  %s1002_s13 = sadd.s32 4294967295, %s924_s12   ;;  %s924_s12 = sphi %s987_s12, %s1198_s12   ;;  %s920_s11 = sphi %s985_s11, %s1200_s11   ;;  %s916_s10 = sphi %s983_s10, %s1202_s10   ;;  %s912_s30 = sphi %s981_s30, %s1201_s30  }
   0x6   : > { %s725_s14 = sadd.s32 4294967294, %s924_s12   ;;  %s1006_s15 = sadd.s32 1, %s924_s12  }
   0x7   : > { %1188 = sst [smem:[#allocation9_spill]] %s1006_s15  ;;  %s32_s16 = sadd.s32 1, %s920_s11 }
   0x8   : > { %s29_s17 = ssub.s32 %s924_s12, %s1006_s15  ;;  %p39_p0 = scmp.ne.s32.totalorder %s920_s11, %s916_s10 }
   0x9   : > { %p30_p1 = scmp.eq.s32.totalorder %s29_s17, 0  ;;  %p40_p2 = scmp.eq.s32.totalorder %s924_s12, 0 }
   0xa   : > { %p45_p3 = scmp.ne.s32.totalorder %s916_s10, %s912_s30  ;;  %p46_p4 = scmp.eq.s32.totalorder %s1002_s13, 0 }
   0xb   : > { %s1018_s18 = scalar_select %p30_p1, %s920_s11, %s32_s16  }
   0xc   : > { %p1020_p5 = por %p40_p2, %p39_p0  ;;  %p1024_p6 = por %p46_p4, %p45_p3 }
   0xd   : > { %1189 = sst [smem:[#allocation10_spill]] %s1018_s18  ;;  %p237_p7 = scmp.eq.s32.totalorder %s1002_s13, 1 }
   0xe   : > { %p243_p8 = scmp.eq.s32.totalorder %s725_s14, 1  ;;  %p770_p10 = scmp.lt.s32.totalorder %s924_s12, 2 }
   0xf   : > { %p1031_p11 = por %p237_p7, %p39_p0  ;;  %s287_s23 = sand.u32 1, %s920_s11  }
  0x10   : > { %p1035_p12 = por %p243_p8, %p45_p3  ;;  %s755_s24 = sshll.u32 %s924_s12, 5 }
  0x11   : > { %s728_s25 = sshll.u32 %s287_s23, 5  ;;  %s296_s28 = scalar_lea.hbm %s1174_s0, %s755_s24 }
  0x12   : > { %s297_s29 = sshll.u32 %s296_s28, 4  ;;  %s291_s14 = scalar_lea.vmem [#allocation2], %s728_s25  ;;  %s298_s29 = int_to_ptr.hbm [resolvable:$true] %s297_s29 }
  0x13   : > { %s299_s16 = sshll.u32 %s291_s14, 4  ;;  %p1046_p13 = pnand %p770_p10, %p1020_p5  ;;  %s300_s16 = int_to_ptr.vmem [resolvable:$true] %s299_s16 }
  0x14   : > { %p731_p0 = scmp.ge.s32.totalorder %s924_s12, 1  ;;  %p307_p1 = scmp.lt.s32.totalorder %s924_s12, 3 }
  0x15   : > { %s288_s18 = scalar_lea.sflag [#allocation3], %s287_s23  ;;  %s828_s11 = sshra.s32 %s298_s29, 4  ;;  %s829_s11 = int_to_ptr.hbm [resolvable:$true] %s828_s11 }
  0x16   : > { %s830_s15 = scalar_lea.hbm %s829_s11, 32  ;;  %p832_p3 = pneg %p1046_p13 }
  0x17   : > { %p831_p2 = scmp.ne.s32.totalorder %s829_s11, %s830_s15  ;;  %s835_s19 = scalar_lea.hbm %s1174_s0, 64 }
  0x18   : > { %p836_p5 = scmp.lt.s32.totalorder %s829_s11, %s1174_s0  ;;  %p837_p8 = scmp.lt.s32.totalorder %s835_s19, %s830_s15 }
  0x19   : > { %p833_p4 = pnand %p832_p3, %p831_p2 }
  0x1a   : > { %p838_p10 = por %p837_p8, %p836_p5 }
  0x1b   : > { %p834_p7 = pneg %p833_p4 }
  0x1d   : > { %p839_p9 = pnand %p838_p10, %p834_p7 }
  0x1f   : > { %842 = shalt.err (!%p839_p9)
}
  0x20   : > { %s926_s23 = smov 256   ;;  %s927_s28 = smov 16  }
  0x21   : > { %765 = dma.hbm_to_vmem [thread:$0]  (!%p1046_p13), %s298_s29, 512, %s300_s16, %s288_s18, %s926_s23, %s926_s23, %s927_s28  }
  0x22   : > { %p308_p2 = pnand %p731_p0, %p307_p1 }
  0x23   : > { %s1067_s14 = sand.u32 (!%p308_p2), 1, %s916_s10  }
  0x24   : > { %311 = sbr.rel (%p308_p2) target bundleno = 589 (0x24d), region = 56  ;;  %s732_s11 = sshll.u32 (!%p308_p2), %s1067_s14, 5 }
  0x25   : > { %s314_s15 = scalar_lea.sflag (!%p308_p2), [#allocation3], %s1067_s14  ;;  %s317_s24 = scalar_lea.vmem (!%p308_p2), [#allocation2], %s732_s11 }
  0x29   : > { %903 = dma.done.wait (%p1024_p6), %s314_s15, 512  }
  0x2a   : > { %905 = vsyncadd (%p1024_p6), %s314_s15, 4294966784  ;;  %v355_v0 = vld [vmem:[%s317_s24 + $0x10] sm:$0xff]  ;;  %v356_v1 = vld [vmem:[%s317_s24 + $0x18] sm:$0xff]  ;;  %vm367_vm0 = vcmask 130048   ;;  %v928_v8 = vmov 0   ;;  %vm403_vm1 = vcmask 1043456  }
  0x2b   : > { %v360_v2 = vadd.f32 %v356_v1, %v355_v0  ;;  %458 = vmatpush.msra.mxu2 %v355_v0  ;;  %v353_v3 = vld [vmem:[%s317_s24] sm:$0xff]  ;;  %v354_v4 = vld [vmem:[%s317_s24 + $0x8] sm:$0xff]  ;;  %809 = vset.pattern.permute.xlu1 %v928_v8  ;;  %vm396_vm2 = vcmask 31744   ;;  %s1134_s15 = scalar_lea.vmem [#allocation5], %s732_s11  ;;  %s756_s24 = sshll.u32 %s1002_s13, 5 }
  0x2c   : > { %v357_v5 = vadd.f32 %v354_v4, %v353_v3  ;;  %v434_v6 = vld [vmem:[%s1175_s1] sm:$0xf]  ;;  %810 = vset.pattern.permute.xlu2 %v928_v8  ;;  %811 = vset.pattern.permute.xlu0 %v928_v8  ;;  %v487_v19 = vld [vmem:[%s1177_s3 + $0x8] sm:$0xff]  ;;  %s648_s16 = scalar_lea.hbm %s1183_s9, %s756_s24  ;;  %s649_s11 = sshll.u32 %s1134_s15, 4  ;;  %s650_s11 = int_to_ptr.vmem [resolvable:$true] %s649_s11 }
  0x2d   : > { %361 = vadd.xlane.f32.xlu0 %v360_v2  ;;  %459 = vmatpush.msra.mxu2 %v353_v3  ;;  %v435_v7 = vld [vmem:[%s1176_s2] sm:$0xf]  ;;  %v393_v27 = vld [vmem:[%s1181_s7 + $0x8] sm:$0xff]  ;;  %s651_s20 = sshll.u32 %s648_s16, 4  ;;  %s637_s13 = scalar_lea.sflag [#allocation4], %s1067_s14  ;;  %s652_s20 = int_to_ptr.hbm [resolvable:$true] %s651_s20 }
  0x2e   : > { %738 = vmatmul.msk.f32.vlgmr.msra.gmra.mxu2 %vm367_vm0, %v434_v6  ;;  %438 = vperm.xlu1 %809, %v435_v7   ;;  %v365_v13 = vld [vmem:[%s1179_s5] sm:$0xf]  ;;  %v395_v34 = vld [vmem:[%s1182_s8 + $0x8] sm:$0xff]  ;;  %s872_s17 = sshra.s32 %s652_s20, 4  ;;  %s878_s27 = scalar_lea.hbm %s1183_s9, 64  ;;  %s873_s17 = int_to_ptr.hbm [resolvable:$true] %s872_s17 }
  0x2f   : > { %v486_v18 = vld [vmem:[%s1177_s3] sm:$0xff]  ;;  %v431_v36 = vld [vmem:[%s1178_s4 + $0x8] sm:$0xff]  ;;  %s874_s25 = scalar_lea.hbm %s873_s17, 32  ;;  %p879_p0 = scmp.lt.s32.totalorder %s873_s17, %s1183_s9 }
  0x30   : > { %v366_v20 = vld [vmem:[%s1180_s6] sm:$0xf]  ;;  %p875_p6 = scmp.ne.s32.totalorder %s873_s17, %s874_s25  ;;  %p880_p1 = scmp.lt.s32.totalorder %s878_s27, %s874_s25 }
  0x31   : > { %v392_v24 = vld [vmem:[%s1181_s7] sm:$0xff] }
  0x32   : > { %v394_v29 = vld [vmem:[%s1182_s8] sm:$0xff]  ;;  %p876_p9 = pnand %p875_p6, %p1031_p11  ;;  %p881_p3 = por %p880_p1, %p879_p0 }
  0x33   : > { %v430_v31 = vld [vmem:[%s1178_s4] sm:$0xff] }
  0x34   : > { %p877_p13 = pneg %p876_p9 }
  0x35   : > { %358 = vadd.xlane.f32.xlu0 %v357_v5 }
  0x36   : > { %p882_p4 = pnand %p881_p3, %p877_p13 }
  0xa0   : > { %v362_v9 = vpop.xlane.xlu0 %361  ;;  %v439_v14 = vpop.permute.xlu1 %438 }
  0xa1   : > { %v364_v10 = vmul.f32 0.00390625, %v362_v9 }
  0xa3   : > { %385 = vmatpush.msra.mxu3 %v364_v10 }
  0xa8   : > { %v359_v11 = vpop.xlane.xlu0 %358 }
  0xa9   : > { %v363_v12 = vmul.f32 0.00390625, %v359_v11 }
  0xab   : > { %386 = vmatpush.msra.mxu3 %v363_v12 }
  0xac   : > { %734 = vmatmul.msk.f32.vlgmr.msra.gmra.mxu3 %vm367_vm0, %v365_v13 }
  0xad   : > { %478 = vmatpush.msrb.mxu3 %v356_v1 }
  0xaf   : > { %479 = vmatpush.msrb.mxu3 %v354_v4 }
  0xb1   : > { %v461_v15 = vpop.f32.mrf.mxu2 }
  0xb2   : > { %v462_v16 = vadd.f32 %v461_v15, %v439_v14 }
  0xb4   : > { %739 = vmatmul.msk.f32.vlgmr.msrb.gmra.mxu3 %vm367_vm0, %v434_v6  ;;  %v484_v17 = vmax.f32 %v462_v16, 0.0 }
  0xb6   : > { %740 = vmatpush.msk.msra.mxu0 %vm403_vm1, %v484_v17 }
  0xb7   : > { %741 = vmatmul.msk.f32.vlgmr.msra.gmra.mxu0 %vm396_vm2, %v486_v18 }
  0xbf   : > { %742 = vmatmul.msk.f32.gmra.mxu0 %vm396_vm2, %v487_v19 }
 0x12f   : > { %v388_v21 = vpop.f32.mrf.mxu3 }
 0x130   : > { %v389_v22 = vadd.f32 %v388_v21, %v366_v20 }
 0x132   : > { %v391_v23 = vmax.f32 %v389_v22, 0.0 }
 0x134   : > { %735 = vmatpush.msk.msra.mxu1 %vm403_vm1, %v391_v23  ;;  %v527_v39 = vpop.f32.mrf.mxu0 }
 0x135   : > { %736 = vmatmul.msk.f32.vlgmr.msra.gmra.mxu1 %vm396_vm2, %v392_v24 }
 0x137   : > { %v481_v25 = vpop.f32.mrf.mxu3 }
 0x138   : > { %v482_v26 = vadd.f32 %v481_v25, %v439_v14 }
 0x13a   : > { %v485_v28 = vmax.f32 %v482_v26, 0.0 }
 0x13c   : > { %757 = vmatpush.msk.msrb.mxu2 %vm403_vm1, %v485_v28  ;;  %743 = vmatpush.msk.msrb.mxu0 %vm403_vm1, %v485_v28  ;;  %v530_v40 = vpop.f32.mrf.mxu0 }
 0x13d   : > { %737 = vmatmul.msk.f32.gmra.mxu1 %vm396_vm2, %v393_v27  ;;  %745 = vmatmul.msk.f32.vlgmr.msrb.gmra.mxu2 %vm396_vm2, %v487_v19 }
 0x13e   : > { %744 = vmatmul.msk.f32.vlgmr.msrb.gmra.mxu0 %vm396_vm2, %v486_v18 }
 0x1b2   : > { %v424_v30 = vpop.f32.mrf.mxu1 }
 0x1b3   : > { %v425_v32 = vadd.f32 %v424_v30, %v394_v29 }
 0x1b5   : > { %v432_v33 = vadd.f32 %v430_v31, %v425_v32 }
 0x1b7   : > { %490 = vperm.xlu1 %809, %v432_v33  }
 0x1ba   : > { %v427_v35 = vpop.f32.mrf.mxu1 }
 0x1bb   : > { %v428_v37 = vadd.f32 %v427_v35, %v395_v34  ;;  %v550_v51 = vpop.f32.mrf.mxu0 }
 0x1bd   : > { %v433_v38 = vadd.f32 %v431_v36, %v428_v37 }
 0x1bf   : > { %495 = vperm.xlu2 %810, %v433_v38  }
 0x1c0   : > { %v553_v41 = vpop.f32.mrf.mxu2 }
 0x219   : > { %v496_v42 = vpop.permute.xlu2 %495 }
 0x21a   : > { %v531_v43 = vadd.f32 %v530_v40, %v496_v42  ;;  %v554_v44 = vadd.f32 %v553_v41, %v496_v42 }
 0x21c   : > { %v748_v45 = vmul.f32 -1.442695, %v531_v43  ;;  %v749_v46 = vmul.f32 -1.442695, %v554_v44 }
 0x21e   : > { %812 = vpow2.f32 %v748_v45 }
 0x21f   : > { %814 = vpow2.f32 %v749_v46 }
 0x224   : > { %v813_v47 = vpop.eup %812 }
 0x225   : > { %v815_v48 = vpop.eup %814  ;;  %v570_v49 = vadd.f32 1.0, %v813_v47 }
 0x226   : > { %v571_v50 = vadd.f32 1.0, %v815_v48 }
 0x227   : > { %816 = vrcp.f32 %v570_v49  ;;  %v613_v62 = vand.u32 2147483648, %v570_v49  ;;  %vm607_vm5 = vweird.f32 %v570_v49  ;;  %v611_v3 = vand.u32 2147483647, %v570_v49 }
 0x228   : > { %818 = vrcp.f32 %v571_v50  ;;  %v628_v63 = vand.u32 2147483648, %v571_v50  ;;  %vm622_vm3 = vweird.f32 %v571_v50  ;;  %v626_v1 = vand.u32 2147483647, %v571_v50 }
 0x229   : > { %v491_v52 = vpop.permute.xlu1 %490  ;;  %v614_v10 = vor.u32 1.1754944e-38, %v613_v62  ;;  %vm612_vm10 = vcmp.eq.f32.partialorder %v611_v3, 8.507059e+37 }
 0x22a   : > { %v528_v53 = vadd.f32 %v527_v39, %v491_v52  ;;  %v551_v54 = vadd.f32 %v550_v51, %v491_v52  ;;  %v629_v8 = vor.u32 1.1754944e-38, %v628_v63  ;;  %vm627_vm9 = vcmp.eq.f32.partialorder %v626_v1, 8.507059e+37 }
 0x22c   : > { %v746_v55 = vmul.f32 -1.442695, %v528_v53  ;;  %v747_v56 = vmul.f32 -1.442695, %v551_v54 }
 0x22d   : > { %v817_v57 = vpop.eup %816 }
 0x22e   : > { %v819_v58 = vpop.eup %818  ;;  %v603_v59 = vmul.f32 %v817_v57, %v570_v49  ;;  %820 = vpow2.f32 %v746_v55  ;;  %vm608_vm6 = vweird.f32 %v817_v57 }
 0x22f   : > { %v618_v60 = vmul.f32 %v819_v58, %v571_v50  ;;  %822 = vpow2.f32 %v747_v56  ;;  %vm623_vm4 = vweird.f32 %v819_v58  ;;  %vm609_vm8 = vmor %vm607_vm5, %vm608_vm6 }
 0x230   : > { %v604_v61 = vsub.f32 1.0, %v603_v59  ;;  %vm1126_vm7 = vmor %vm622_vm3, %vm623_vm4 }
 0x231   : > { %v619_v0 = vsub.f32 1.0, %v618_v60 }
 0x232   : > { %v605_v2 = vmul.f32 %v817_v57, %v604_v61 }
 0x233   : > { %v620_v4 = vmul.f32 %v819_v58, %v619_v0 }
 0x234   : > { %v821_v5 = vpop.eup %820  ;;  %v606_v6 = vadd.f32 %v817_v57, %v605_v2 }
 0x235   : > { %v823_v9 = vpop.eup %822  ;;  %v621_v11 = vadd.f32 %v819_v58, %v620_v4  ;;  %v568_v12 = vadd.f32 1.0, %v821_v5 }
 0x236   : > { %v610_v13 = vsel %vm609_vm8, %v817_v57, %v606_v6  ;;  %v569_v14 = vadd.f32 1.0, %v823_v9 }
 0x237   : > { %v615_v15 = vsel %vm612_vm10, %v614_v10, %v610_v13  ;;  %v625_v16 = vsel %vm1126_vm7, %v819_v58, %v621_v11  ;;  %824 = vrcp.f32 %v568_v12  ;;  %v583_v23 = vand.u32 2147483648, %v568_v12 }
 0x238   : > { %634 = vst [vmem:[%s1134_s15 + $0x10] sm:$0xff] %v615_v15  ;;  %v630_v17 = vsel %vm627_vm9, %v629_v8, %v625_v16  ;;  %826 = vrcp.f32 %v569_v14  ;;  %v581_v26 = vand.u32 2147483647, %v568_v12  ;;  %v598_v27 = vand.u32 2147483648, %v569_v14 }
 0x239   : > { %635 = vst [vmem:[%s1134_s15 + $0x18] sm:$0xff] %v630_v17  ;;  %v596_v29 = vand.u32 2147483647, %v569_v14  ;;  %vm577_vm13 = vweird.f32 %v568_v12  ;;  %v584_v31 = vor.u32 1.1754944e-38, %v583_v23  ;;  %vm592_vm15 = vweird.f32 %v569_v14 }
 0x23a   : > { %vm582_vm0 = vcmp.eq.f32.partialorder %v581_v26, 8.507059e+37  ;;  %v599_v34 = vor.u32 1.1754944e-38, %v598_v27 }
 0x23b   : > { %vm597_vm2 = vcmp.eq.f32.partialorder %v596_v29, 8.507059e+37 }
 0x23d   : > { %v825_v18 = vpop.eup %824 }
 0x23e   : > { %v827_v19 = vpop.eup %826  ;;  %v573_v20 = vmul.f32 %v825_v18, %v568_v12  ;;  %vm578_vm11 = vweird.f32 %v825_v18 }
 0x23f   : > { %v588_v21 = vmul.f32 %v827_v19, %v569_v14  ;;  %vm593_vm12 = vweird.f32 %v827_v19  ;;  %vm579_vm14 = vmor %vm577_vm13, %vm578_vm11 }
 0x240   : > { %v574_v22 = vsub.f32 1.0, %v573_v20  ;;  %vm594_vm1 = vmor %vm592_vm15, %vm593_vm12 }
 0x241   : > { %v589_v24 = vsub.f32 1.0, %v588_v21 }
 0x242   : > { %v575_v25 = vmul.f32 %v825_v18, %v574_v22 }
 0x243   : > { %v590_v28 = vmul.f32 %v827_v19, %v589_v24 }
 0x244   : > { %v576_v30 = vadd.f32 %v825_v18, %v575_v25 }
 0x245   : > { %v591_v32 = vadd.f32 %v827_v19, %v590_v28 }
 0x246   : > { %v580_v33 = vsel %vm579_vm14, %v825_v18, %v576_v30 }
 0x247   : > { %v585_v35 = vsel %vm582_vm0, %v584_v31, %v580_v33  ;;  %v595_v36 = vsel %vm594_vm1, %v827_v19, %v591_v32 }
 0x248   : > { %v600_v37 = vsel %vm597_vm2, %v599_v34, %v595_v36  ;;  %632 = vst [vmem:[%s1134_s15] sm:$0xff] %v585_v35 }
 0x249   : > { %633 = vst [vmem:[%s1134_s15 + $0x8] sm:$0xff] %v600_v37 }
 0x24a   : > { %885 = shalt.err (!%p882_p4)
}
 0x24b   : > { %s929_s14 = smov 256   ;;  %s930_s15 = smov 16  }
 0x24c   : > { %760 = dma.vmem_to_hbm [thread:$0]  (%p1031_p11), %s650_s11, 512, %s652_s20, %s637_s13, %s929_s14, %s929_s14, %s930_s15  }
 0x24d PF: > { %s666_s24 = sand.u32 1, %s912_s30   ;;  %p1197_p7 = scmp.ge.s32.totalorder %s924_s12, 2 }
 0x24e   : > { %s667_s18 = scalar_lea.sflag [#allocation4], %s666_s24 }
 0x24f   : > { %p767_p5 = pnand %p1197_p7, %p1035_p12 }
 0x251   : > { %p768_p8 = pneg %p767_p5 }
 0x253   : > { %907 = dma.done.wait (%p768_p8), %s667_s18, 512  }
 0x254   : > { %909 = vsyncadd (%p768_p8), %s667_s18, 4294966784  ;;  %s1198_s12 = sld [smem:[#allocation9_spill]]  ;;  %s1201_s30 = smov %s916_s10 }
 0x255   : > { %s1199_s29 = sld [smem:[#allocation8_spill]] }
 0x256   : > { %s1200_s11 = sld [smem:[#allocation10_spill]] }
 0x25a   : > { %p22_p10 = scmp.ge.s32.totalorder %s1198_s12, 4  }
 0x25b   : > { %s1202_s10 = smov %s1199_s29 }
 0x25c   :  { %24 = sbr.rel (!%p22_p10) target bundleno = 5 (0x5), region = 101 }
 0x261   :  { %673 = vsyncpa [#allocation3], 1 }
 0x262   :  { %675 = vsyncpa [#allocation3 + $0x1], 1 }
 0x263   :  { %676 = vsyncpa [#allocation4], 1 }
 0x264   :  { %678 = vsyncpa [#allocation4 + $0x1], 1 }

</bundles_post_ra>
